<compile_context>
chip_gen: v6e
topology: v6e:2x2x1
jax: 0.10.0
libtpu: 0.0.40
codegen_flags: <defaults>
</compile_context>

<pallas_src>
import functools

import jax
import jax.numpy as jnp
from jax.experimental import pallas as pl
from jax.experimental.pallas import tpu as pltpu


TILE_B = 512  # multiple of 256: fills v6e/v7x's 256-row MXU, amortizes per-step overhead


def _round_up(n, m):
    return ((n + m - 1) // m) * m


def dqn_kernel(x_ref, w1_ref, b1_ref, w2_ref, b2_ref,
               w3_ref, b3_ref, w4_ref, b4_ref, o_ref):
    # Per-tile cast of the f32 activations to bf16 (cheap VPU, hidden under DMA).
    x = x_ref[...].astype(jnp.bfloat16)

    # Layer 1: Linear(18, 64) + ReLU   (bf16 x bf16 MXU, f32 accumulate)
    h = jnp.dot(x, w1_ref[...], preferred_element_type=jnp.float32)
    h = jnp.maximum(h + b1_ref[...], 0.0)

    # Layer 2: Linear(64, 256) + Dropout(0.2) [identity in eval] + ReLU
    h = jnp.dot(h.astype(jnp.bfloat16), w2_ref[...],
                preferred_element_type=jnp.float32)
    h = jnp.maximum(h + b2_ref[...], 0.0)

    # Layer 3: Linear(256, 64) + ReLU
    h = jnp.dot(h.astype(jnp.bfloat16), w3_ref[...],
                preferred_element_type=jnp.float32)
    h = jnp.maximum(h + b3_ref[...], 0.0)

    # Layer 4: Linear(64, 6)  (final bias-add stays in f32)
    out = jnp.dot(h.astype(jnp.bfloat16), w4_ref[...],
                  preferred_element_type=jnp.float32)
    o_ref[...] = (out + b4_ref[...]).astype(o_ref.dtype)


@functools.partial(jax.jit, static_argnames=("tile_b",))
def dqn_forward(x, params, *, tile_b=TILE_B):
    """x: (B, 18) float32. params: prepared (bf16 weights, f32 biases). Returns (B, 6) f32."""
    B = x.shape[0]

    # Pick the effective batch tile:
    #  * large batches: >= 2 blocks (both v7x TensorCores busy), tiles a multiple
    #    of 256 so the v6e/v7x MXU rows are filled, capped at `tile_b`.
    #  * small batches: shrink to a multiple of 8 so no wasted rows are computed.
    if B >= 2 * 256:
        tile_b_eff = min(tile_b, _round_up((B + 1) // 2, 256))
    else:
        tile_b_eff = min(tile_b, _round_up(B, 8))
    n_blocks = pl.cdiv(B, tile_b_eff)

    w1, b1 = params["w1"], params["b1"]
    w2, b2 = params["w2"], params["b2"]
    w3, b3 = params["w3"], params["b3"]
    w4, b4 = params["w4"], params["b4"]

    def const_map(i):  # weights/biases: same (only) block every grid step
        return (0, 0)

    # No jnp.pad: Pallas masks the ragged last block; rows never mix across the
    # batch dim, so its garbage rows never reach valid rows of the (B, 6) output.
    out = pl.pallas_call(
        dqn_kernel,
        out_shape=jax.ShapeDtypeStruct((B, 6), jnp.float32),
        grid_spec=pltpu.PrefetchScalarGridSpec(
            num_scalar_prefetch=0,
            grid=(n_blocks,),
            in_specs=[
                # activation stream: pipelined batch tiles (f32, cast in-kernel)
                pl.BlockSpec((tile_b_eff, 18), lambda i: (i, 0)),
                # weights / biases: full-array blocks, VMEM-resident across grid
                pl.BlockSpec((18, 64), const_map),
                pl.BlockSpec((1, 64), const_map),
                pl.BlockSpec((64, 256), const_map),
                pl.BlockSpec((1, 256), const_map),
                pl.BlockSpec((256, 64), const_map),
                pl.BlockSpec((1, 64), const_map),
                pl.BlockSpec((64, 6), const_map),
                pl.BlockSpec((1, 6), const_map),
            ],
            out_specs=pl.BlockSpec((tile_b_eff, 6), lambda i: (i, 0)),
        ),
        compiler_params=pltpu.CompilerParams(
            # batch axis is independent -> megacore sharding on v7x (2 TCs)
            dimension_semantics=("parallel",),
        ),
    )(x, w1, b1, w2, b2, w3, b3, w4, b4)

    return out


def init_params(key):
    """Deterministic PyTorch-style (kaiming-uniform-ish) init for each Linear (f32)."""
    def linear_init(k, fan_in, fan_out):
        k_w, k_b = jax.random.split(k)
        bound = 1.0 / jnp.sqrt(fan_in)
        # stored as (in, out) so the kernel computes x @ W
        # (note: a real PyTorch Linear checkpoint stores (out, in) -> transpose on import)
        w = jax.random.uniform(k_w, (fan_in, fan_out), jnp.float32, -bound, bound)
        # bias kept 2-D (1, out) for TPU-friendly broadcasting inside the kernel
        b = jax.random.uniform(k_b, (1, fan_out), jnp.float32, -bound, bound)
        return w, b

    keys = jax.random.split(key, 4)
    w1, b1 = linear_init(keys[0], 18, 64)
    w2, b2 = linear_init(keys[1], 64, 256)
    w3, b3 = linear_init(keys[2], 256, 64)
    w4, b4 = linear_init(keys[3], 64, 6)
    return dict(w1=w1, b1=b1, w2=w2, b2=b2, w3=w3, b3=b3, w4=w4, b4=b4)


def prepare_params(params):
    """One-time (outside the per-call path) cast of matmul weights to bf16; biases stay f32."""
    out = dict(params)
    for name in ("w1", "w2", "w3", "w4"):
        out[name] = params[name].astype(jnp.bfloat16)
    return out


def dqn_reference(x, p):
    """Pure-JAX f32 reference (dropout = identity, eval mode)."""
    h = jnp.maximum(x @ p["w1"] + p["b1"], 0.0)
    h = jnp.maximum(h @ p["w2"] + p["b2"], 0.0)
    h = jnp.maximum(h @ p["w3"] + p["b3"], 0.0)
    return h @ p["w4"] + p["b4"]


if __name__ == "__main__":
    key = jax.random.PRNGKey(0)
    k_params, k_x, k_x2 = jax.random.split(key, 3)

    params_f32 = init_params(k_params)
    params = prepare_params(params_f32)   # one-time bf16 weight cast, off the per-call path

    # small batch (ragged, < one tile)
    B = 8
    x = jax.random.normal(k_x, (B, 18), dtype=jnp.float32)
    out = jax.block_until_ready(dqn_forward(x, params))
    ref = dqn_reference(x, params_f32)
    assert out.shape == (B, 6), out.shape
    # bf16 matmul inputs (f32 accumulation) => loosened tolerance vs f32 reference
    assert jnp.allclose(out, ref, atol=5e-2, rtol=5e-2), (
        "mismatch vs reference (small batch): max abs err = "
        f"{float(jnp.max(jnp.abs(out - ref)))}")

    # larger batch exercising the multi-block / ragged-last-block path
    B2 = 600
    x2 = jax.random.normal(k_x2, (B2, 18), dtype=jnp.float32)
    out2 = jax.block_until_ready(dqn_forward(x2, params))
    ref2 = dqn_reference(x2, params_f32)
    assert out2.shape == (B2, 6), out2.shape
    assert jnp.allclose(out2, ref2, atol=5e-2, rtol=5e-2), (
        "mismatch vs reference (large batch): max abs err = "
        f"{float(jnp.max(jnp.abs(out2 - ref2)))}")

    print("KERNEL_OK")
</pallas_src>

<mosaic_0001>
module attributes {stable_mosaic.version = 11 : i64} {
  func.func @dqn_kernel(%arg0: i32, %arg1: memref<8x18xf32, #tpu.memory_space<vmem>>, %arg2: memref<18x64xbf16, #tpu.memory_space<vmem>>, %arg3: memref<1x64xf32, #tpu.memory_space<vmem>>, %arg4: memref<64x256xbf16, #tpu.memory_space<vmem>>, %arg5: memref<1x256xf32, #tpu.memory_space<vmem>>, %arg6: memref<256x64xbf16, #tpu.memory_space<vmem>>, %arg7: memref<1x64xf32, #tpu.memory_space<vmem>>, %arg8: memref<64x6xbf16, #tpu.memory_space<vmem>>, %arg9: memref<1x6xf32, #tpu.memory_space<vmem>>, %arg10: memref<8x6xf32, #tpu.memory_space<vmem>>) attributes {dimension_semantics = [#tpu.dimension_semantics<parallel>], iteration_bounds = array<i64: 1>, scalar_prefetch = 0 : i64, scratch_operands = 0 : i64, tpu.core_type = #tpu.core_type<tc>, window_params = [{transform_indices = @transform_0, window_bounds = array<i64: 8, 18>}, {pipeline_mode = #tpu.pipeline_mode<synchronous>, transform_indices = @transform_1, window_bounds = array<i64: 18, 64>}, {pipeline_mode = #tpu.pipeline_mode<synchronous>, transform_indices = @transform_2, window_bounds = array<i64: 1, 64>}, {pipeline_mode = #tpu.pipeline_mode<synchronous>, transform_indices = @transform_3, window_bounds = array<i64: 64, 256>}, {pipeline_mode = #tpu.pipeline_mode<synchronous>, transform_indices = @transform_4, window_bounds = array<i64: 1, 256>}, {pipeline_mode = #tpu.pipeline_mode<synchronous>, transform_indices = @transform_5, window_bounds = array<i64: 256, 64>}, {pipeline_mode = #tpu.pipeline_mode<synchronous>, transform_indices = @transform_6, window_bounds = array<i64: 1, 64>}, {pipeline_mode = #tpu.pipeline_mode<synchronous>, transform_indices = @transform_7, window_bounds = array<i64: 64, 6>}, {pipeline_mode = #tpu.pipeline_mode<synchronous>, transform_indices = @transform_8, window_bounds = array<i64: 1, 6>}, {transform_indices = @transform_9, window_bounds = array<i64: 8, 6>}]} {
    %c0 = arith.constant 0 : index
    %c0_0 = arith.constant 0 : index
    %0 = vector.load %arg1[%c0, %c0_0] : memref<8x18xf32, #tpu.memory_space<vmem>>, vector<8x18xf32>
    %1 = arith.truncf %0 : vector<8x18xf32> to vector<8x18xbf16>
    %c0_1 = arith.constant 0 : index
    %c0_2 = arith.constant 0 : index
    %2 = vector.load %arg2[%c0_1, %c0_2] : memref<18x64xbf16, #tpu.memory_space<vmem>>, vector<18x64xbf16>
    %cst = arith.constant dense<0.000000e+00> : vector<8x64xf32>
    %3 = tpu.matmul %1, %2, %cst {dimension_numbers = #tpu.dot_dimension_numbers<[1], [0], [0], [1], [0, 0, 1, 1], [], []>} : vector<8x18xbf16>, vector<18x64xbf16>, vector<8x64xf32> -> vector<8x64xf32>
    %c0_3 = arith.constant 0 : index
    %c0_4 = arith.constant 0 : index
    %4 = vector.load %arg3[%c0_3, %c0_4] : memref<1x64xf32, #tpu.memory_space<vmem>>, vector<1x64xf32>
    %5 = vector.broadcast %4 : vector<1x64xf32> to vector<8x64xf32>
    %6 = arith.addf %3, %5 : vector<8x64xf32>
    %cst_5 = arith.constant 0.000000e+00 : f32
    %7 = vector.broadcast %cst_5 : f32 to vector<8x64xf32>
    %8 = arith.maximumf %6, %7 : vector<8x64xf32>
    %9 = arith.truncf %8 : vector<8x64xf32> to vector<8x64xbf16>
    %c0_6 = arith.constant 0 : index
    %c0_7 = arith.constant 0 : index
    %10 = vector.load %arg4[%c0_6, %c0_7] : memref<64x256xbf16, #tpu.memory_space<vmem>>, vector<64x256xbf16>
    %cst_8 = arith.constant dense<0.000000e+00> : vector<8x256xf32>
    %11 = tpu.matmul %9, %10, %cst_8 {dimension_numbers = #tpu.dot_dimension_numbers<[1], [0], [0], [1], [0, 0, 1, 1], [], []>} : vector<8x64xbf16>, vector<64x256xbf16>, vector<8x256xf32> -> vector<8x256xf32>
    %c0_9 = arith.constant 0 : index
    %c0_10 = arith.constant 0 : index
    %12 = vector.load %arg5[%c0_9, %c0_10] : memref<1x256xf32, #tpu.memory_space<vmem>>, vector<1x256xf32>
    %13 = vector.broadcast %12 : vector<1x256xf32> to vector<8x256xf32>
    %14 = arith.addf %11, %13 : vector<8x256xf32>
    %cst_11 = arith.constant 0.000000e+00 : f32
    %15 = vector.broadcast %cst_11 : f32 to vector<8x256xf32>
    %16 = arith.maximumf %14, %15 : vector<8x256xf32>
    %17 = arith.truncf %16 : vector<8x256xf32> to vector<8x256xbf16>
    %c0_12 = arith.constant 0 : index
    %c0_13 = arith.constant 0 : index
    %18 = vector.load %arg6[%c0_12, %c0_13] : memref<256x64xbf16, #tpu.memory_space<vmem>>, vector<256x64xbf16>
    %cst_14 = arith.constant dense<0.000000e+00> : vector<8x64xf32>
    %19 = tpu.matmul %17, %18, %cst_14 {dimension_numbers = #tpu.dot_dimension_numbers<[1], [0], [0], [1], [0, 0, 1, 1], [], []>} : vector<8x256xbf16>, vector<256x64xbf16>, vector<8x64xf32> -> vector<8x64xf32>
    %c0_15 = arith.constant 0 : index
    %c0_16 = arith.constant 0 : index
    %20 = vector.load %arg7[%c0_15, %c0_16] : memref<1x64xf32, #tpu.memory_space<vmem>>, vector<1x64xf32>
    %21 = vector.broadcast %20 : vector<1x64xf32> to vector<8x64xf32>
    %22 = arith.addf %19, %21 : vector<8x64xf32>
    %cst_17 = arith.constant 0.000000e+00 : f32
    %23 = vector.broadcast %cst_17 : f32 to vector<8x64xf32>
    %24 = arith.maximumf %22, %23 : vector<8x64xf32>
    %25 = arith.truncf %24 : vector<8x64xf32> to vector<8x64xbf16>
    %c0_18 = arith.constant 0 : index
    %c0_19 = arith.constant 0 : index
    %26 = vector.load %arg8[%c0_18, %c0_19] : memref<64x6xbf16, #tpu.memory_space<vmem>>, vector<64x6xbf16>
    %cst_20 = arith.constant dense<0.000000e+00> : vector<8x6xf32>
    %27 = tpu.matmul %25, %26, %cst_20 {dimension_numbers = #tpu.dot_dimension_numbers<[1], [0], [0], [1], [0, 0, 1, 1], [], []>} : vector<8x64xbf16>, vector<64x6xbf16>, vector<8x6xf32> -> vector<8x6xf32>
    %c0_21 = arith.constant 0 : index
    %c0_22 = arith.constant 0 : index
    %28 = vector.load %arg9[%c0_21, %c0_22] : memref<1x6xf32, #tpu.memory_space<vmem>>, vector<1x6xf32>
    %29 = vector.broadcast %28 : vector<1x6xf32> to vector<8x6xf32>
    %30 = arith.addf %27, %29 : vector<8x6xf32>
    %c0_23 = arith.constant 0 : index
    %c0_24 = arith.constant 0 : index
    %31 = vector.load %arg10[%c0_23, %c0_24] : memref<8x6xf32, #tpu.memory_space<vmem>>, vector<8x6xf32>
    tpu.vector_store %arg10[%c0_23, %c0_24], %30 {strides = array<i32>} : memref<8x6xf32, #tpu.memory_space<vmem>>, vector<8x6xf32>,
    return
  }
  func.func @transform_0(%arg0: i32) -> (i32, i32) {
    %c0_i32 = arith.constant 0 : i32
    %c0_i32_0 = arith.constant 0 : i32
    return %arg0, %c0_i32 : i32, i32
  }
  func.func @transform_1(%arg0: i32) -> (i32, i32) {
    %c0_i32 = arith.constant 0 : i32
    %c0_i32_0 = arith.constant 0 : i32
    %c0_i32_1 = arith.constant 0 : i32
    return %c0_i32, %c0_i32_0 : i32, i32
  }
  func.func @transform_2(%arg0: i32) -> (i32, i32) {
    %c0_i32 = arith.constant 0 : i32
    %c0_i32_0 = arith.constant 0 : i32
    %c0_i32_1 = arith.constant 0 : i32
    return %c0_i32, %c0_i32_0 : i32, i32
  }
  func.func @transform_3(%arg0: i32) -> (i32, i32) {
    %c0_i32 = arith.constant 0 : i32
    %c0_i32_0 = arith.constant 0 : i32
    %c0_i32_1 = arith.constant 0 : i32
    return %c0_i32, %c0_i32_0 : i32, i32
  }
  func.func @transform_4(%arg0: i32) -> (i32, i32) {
    %c0_i32 = arith.constant 0 : i32
    %c0_i32_0 = arith.constant 0 : i32
    %c0_i32_1 = arith.constant 0 : i32
    return %c0_i32, %c0_i32_0 : i32, i32
  }
  func.func @transform_5(%arg0: i32) -> (i32, i32) {
    %c0_i32 = arith.constant 0 : i32
    %c0_i32_0 = arith.constant 0 : i32
    %c0_i32_1 = arith.constant 0 : i32
    return %c0_i32, %c0_i32_0 : i32, i32
  }
  func.func @transform_6(%arg0: i32) -> (i32, i32) {
    %c0_i32 = arith.constant 0 : i32
    %c0_i32_0 = arith.constant 0 : i32
    %c0_i32_1 = arith.constant 0 : i32
    return %c0_i32, %c0_i32_0 : i32, i32
  }
  func.func @transform_7(%arg0: i32) -> (i32, i32) {
    %c0_i32 = arith.constant 0 : i32
    %c0_i32_0 = arith.constant 0 : i32
    %c0_i32_1 = arith.constant 0 : i32
    return %c0_i32, %c0_i32_0 : i32, i32
  }
  func.func @transform_8(%arg0: i32) -> (i32, i32) {
    %c0_i32 = arith.constant 0 : i32
    %c0_i32_0 = arith.constant 0 : i32
    %c0_i32_1 = arith.constant 0 : i32
    return %c0_i32, %c0_i32_0 : i32, i32
  }
  func.func @transform_9(%arg0: i32) -> (i32, i32) {
    %c0_i32 = arith.constant 0 : i32
    %c0_i32_0 = arith.constant 0 : i32
    return %arg0, %c0_i32 : i32, i32
  }
}

</mosaic_0001>

<bundles_post_ra>
// kernel: dqn_forward.1
= control target key start
LH: loop header
LB: loop body
LE: loop exit
PB: predicated region body
PF: predicated region fallthrough
CT: control target
= control target key end

     0   :  { %v635_v1 = vmov 0.0   ;;  %vm59_vm0 = vcmask 1040384   ;;  %vm636_vm1 = vmmov 0   ;;  %vm55_vm2 = vcmask 146432   ;;  %s809_s0 = inlined_call_operand.vmem [shape: f32[8,18], index: 0, kind: input, shape index: {}]   ;;  %s810_s1 = inlined_call_operand.vmem [shape: bf16[18,64], index: 1, kind: input, shape index: {}]   ;;  %s811_s2 = inlined_call_operand.vmem [shape: f32[1,64], index: 2, kind: input, shape index: {}]   ;;  %s812_s3 = inlined_call_operand.vmem [shape: bf16[64,256], index: 3, kind: input, shape index: {}]   ;;  %s813_s4 = inlined_call_operand.vmem [shape: f32[1,256], index: 4, kind: input, shape index: {}]   ;;  %s814_s5 = inlined_call_operand.vmem [shape: bf16[256,64], index: 5, kind: input, shape index: {}]   ;;  %s815_s6 = inlined_call_operand.vmem [shape: f32[1,64], index: 6, kind: input, shape index: {}]   ;;  %s816_s7 = inlined_call_operand.vmem [shape: bf16[64,6], index: 7, kind: input, shape index: {}]   ;;  %s817_s8 = inlined_call_operand.vmem [shape: f32[1,6], index: 8, kind: input, shape index: {}]   ;;  %s818_s9 = inlined_call_operand.hbm [shape: f32[8,6], index: 9, kind: output, shape index: {}]  }
   0x1   :  { %v579_v0 = vld [vmem:[%s810_s1 + $0x8] ss:$0 sps:$4 sm:$0x11]   ;;  %555 = vmatprep.subr.bf16.mxu0 %v635_v1  ;;  %v580_v2 = vld [vmem:[%s810_s1] sm:$0xff]   ;;  %559 = vmatprep.mubr.msk.bf16.mxu0 %vm636_vm1, %v635_v1  ;;  %v581_v5 = vld [vmem:[%s812_s3 + $0x34] ss:$8 sps:$4 sm:$0xff]  }
   0x2   :  { %v61_v3 = vsel %vm59_vm0, %v579_v0, 0  ;;  %v34_v4 = vld [vmem:[%s809_s0] sm:$0xff]  ;;  %v583_v6 = vld [vmem:[%s812_s3 + $0x30] ss:$8 sps:$4 sm:$0xff]   ;;  %177 = vmatprep.subr.bf16.mxu1 %v581_v5  ;;  %v587_v10 = vld [vmem:[%s812_s3 + $0x14] ss:$8 sps:$4 sm:$0xff]  }
   0x3   :  { %556 = vmatpush3.bf16.msra.mxu0 %v61_v3  ;;  %v584_v7 = vld [vmem:[%s812_s3 + $0x24] ss:$8 sps:$4 sm:$0xff]   ;;  %v586_v8 = vld [vmem:[%s812_s3 + $0x20] ss:$8 sps:$4 sm:$0xff]   ;;  %v35_v9 = vpack.c.bf16 %v34_v4, %v34_v4  ;;  %178 = vmatpush1.bf16.msra.mxu1 %v583_v6 }
   0x4   :  { %557 = vmatprep.subr.bf16.mxu0 %v635_v1  ;;  %179 = vmatprep.subr.bf16.mxu1 %v584_v7 }
   0x7   :  { %558 = vmatpush3.bf16.msra.mxu0 %v580_v2  ;;  %180 = vmatpush1.bf16.msra.mxu1 %v586_v8 }
   0x8   :  { %181 = vmatprep.subr.bf16.mxu1 %v587_v10 }
   0xa   :  { %560 = vmatmul.mubr.msk.bf16.vlgmr.msra.gmra.mxu0 %vm55_vm2, %v35_v9 }
   0xb   :  { %14 = vsyncpa [#allocation3], 0  ;;  %v589_v11 = vld [vmem:[%s812_s3 + $0x10] ss:$8 sps:$4 sm:$0xff]   ;;  %v590_v12 = vld [vmem:[%s812_s3 + $0x4] ss:$8 sps:$4 sm:$0xff]   ;;  %v115_v40 = vlaneseq }
   0xc   :  { %182 = vmatpush1.bf16.msra.mxu1 %v589_v11  ;;  %v592_v13 = vld [vmem:[%s812_s3] ss:$8 sps:$4 sm:$0xff]   ;;  %v637_v14 = vmov 0   ;;  %v593_v15 = vld [vmem:[%s814_s5 + $0x78] sm:$0xff]   ;;  %v595_v17 = vld [vmem:[%s814_s5 + $0x70] sm:$0xff]   ;;  %vm165_vm3 = vcmask 523264  }
   0xd   :  { %183 = vmatprep.subr.bf16.mxu1 %v590_v12  ;;  %201 = vmatprep.mubr.bf16.mxu1 %v637_v14  ;;  %v594_v16 = vld [vmem:[%s814_s5 + $0x38] sm:$0xff]   ;;  %v596_v18 = vld [vmem:[%s814_s5 + $0x30] sm:$0xff]   ;;  %v597_v19 = vld [vmem:[%s814_s5 + $0x68] sm:$0xff]   ;;  %v116_v41 = vshrl.u32 %v115_v40, 7  ;;  %vm473_vm4 = vcmask 48128  }
   0xe   :  { %528 = vmatprep.subr.bf16.mxu0 %v593_v15  ;;  %v598_v20 = vld [vmem:[%s814_s5 + $0x28] sm:$0xff]   ;;  %v599_v21 = vld [vmem:[%s814_s5 + $0x60] sm:$0xff]   ;;  %v601_v23 = vld [vmem:[%s814_s5 + $0x58] sm:$0xff]  }
   0xf   :  { %529 = vmatpush3.bf16.msra.mxu0 %v594_v16  ;;  %v600_v22 = vld [vmem:[%s814_s5 + $0x20] sm:$0xff]   ;;  %v602_v24 = vld [vmem:[%s814_s5 + $0x18] sm:$0xff]   ;;  %v603_v25 = vld [vmem:[%s814_s5 + $0x50] sm:$0xff]   ;;  %v117_v42 = vsub.s32 0, %v116_v41  ;;  %v121_v44 = vsub.s32 1, %v116_v41 }
  0x10   :  { %184 = vmatpush1.bf16.msra.mxu1 %v592_v13  ;;  %530 = vmatprep.subr.bf16.mxu0 %v595_v17  ;;  %v604_v26 = vld [vmem:[%s814_s5 + $0x10] sm:$0xff]   ;;  %v489_v27 = vld [vmem:[%s811_s2] ss:$0 sm:$0xff]  ;;  %v605_v35 = vld [vmem:[%s814_s5 + $0x48] sm:$0xff]  }
  0x11   :  { %563 = vmatprep.subr.bf16.mxu1 %v635_v1  ;;  %v606_v36 = vld [vmem:[%s814_s5 + $0x8] sm:$0xff]   ;;  %v607_v37 = vld [vmem:[%s814_s5 + $0x40] sm:$0xff]   ;;  %v609_v39 = vld [vmem:[%s816_s7 + $0x18] sm:$0xff]  }
  0x12   :  { %v608_v38 = vld [vmem:[%s814_s5] sm:$0xff]   ;;  %v610_v57 = vld [vmem:[%s816_s7 + $0x10] sm:$0xff]   ;;  %v611_v58 = vld [vmem:[%s816_s7 + $0x8] sm:$0xff]  }
  0x13   :  { %531 = vmatpush3.bf16.msra.mxu0 %v596_v18  ;;  %v113_v43 = vld [vmem:[%s813_s4] sm:$0x3] }
  0x14   :  { %532 = vmatprep.subr.bf16.mxu0 %v597_v19  ;;  %v118_v45 = vrot.slane %v113_v43, %v117_v42  ;;  %v122_v46 = vrot.slane %v113_v43, %v121_v44  ;;  %v612_v59 = vld [vmem:[%s816_s7] sm:$0xff]   ;;  %s638_s7 = smov [#allocation2]  }
  0x15   :  { %v502_v61 = vld [vmem:[%s815_s6] ss:$0 sm:$0xff]  ;;  %s481_s26 = sshll.u32 %s638_s7, 4  ;;  %s482_s26 = int_to_ptr.vmem [resolvable:$true] %s481_s26 }
  0x16   :  { %s613_s6 = scalar_lea.vmem %s482_s26, 128  ;;  %p618_p1 = scmp.lt.s32.totalorder %s482_s26, %s482_s26 }
  0x17   :  { %533 = vmatpush3.bf16.msra.mxu0 %v598_v20  ;;  %p614_p0 = scmp.ne.s32.totalorder %s482_s26, %s613_s6  ;;  %p619_p2 = scmp.lt.s32.totalorder %s613_s6, %s613_s6 }
  0x18   :  { %534 = vmatprep.subr.bf16.mxu0 %v599_v21 }
  0x19   :  { %p620_p3 = por %p619_p2, %p618_p1 }
  0x1b   :  { %535 = vmatpush3.bf16.msra.mxu0 %v600_v22  ;;  %p621_p4 = pnand %p620_p3, %p614_p0 }
  0x1c   :  { %536 = vmatprep.subr.bf16.mxu0 %v601_v23 }
  0x1f   :  { %537 = vmatpush3.bf16.msra.mxu0 %v602_v24 }
  0x20   :  { %538 = vmatprep.subr.bf16.mxu0 %v603_v25 }
  0x23   :  { %539 = vmatpush3.bf16.msra.mxu0 %v604_v26 }
  0x24   :  { %540 = vmatprep.subr.bf16.mxu0 %v605_v35 }
  0x27   :  { %541 = vmatpush3.bf16.msra.mxu0 %v606_v36 }
  0x28   :  { %542 = vmatprep.subr.bf16.mxu0 %v607_v37 }
  0x2b   :  { %543 = vmatpush3.bf16.msra.mxu0 %v608_v38 }
  0xca   :  { %v97_v28 = vpop.f32.mrf.mxu0 }
  0xcb   :  { %v98_v29 = vadd.f32 %v489_v27, %v97_v28 }
  0xcc   :  { %v561_v30 = vpop.f32.mrf.mxu0 }
  0xcd   :  { %v103_v31 = vmax.f32 %v98_v29, 0.0 }
  0xce   :  { %v100_v32 = vpop.f32.mrf.mxu0 }
  0xcf   :  { %v104_v33 = vpack.c.bf16 %v103_v31, %v103_v31 }
  0xd0   :  { %v562_v34 = vpop.f32.mrf.mxu0 }
  0xd1   :  { %501 = vmatmul.mubr.msk.bf16.vlgmr.msra.gmra.mxu1 %vm165_vm3, %v104_v33 }
  0xd2   :  { %571 = vmatprep.mubr.msk.bf16.mxu1 %vm636_vm1, %v635_v1  ;;  %564 = vmatpush3.bf16.msra.mxu1 %v609_v39 }
  0xd3   :  { %565 = vmatprep.subr.bf16.mxu1 %v635_v1 }
  0xd6   :  { %566 = vmatpush3.bf16.msra.mxu1 %v610_v57 }
  0xd7   :  { %567 = vmatprep.subr.bf16.mxu1 %v635_v1 }
  0xda   :  { %568 = vmatpush3.bf16.msra.mxu1 %v611_v58 }
  0xdb   :  { %569 = vmatprep.subr.bf16.mxu1 %v635_v1  ;;  %v519_v1 = vld [vmem:[%s817_s8] ss:$0 sm:$0xff] }
  0xde   :  { %570 = vmatpush3.bf16.msra.mxu1 %v612_v59 }
 0x191   :  { %v203_v47 = vpop.f32.mrf.mxu1 }
 0x192   :  { %v204_v48 = vadd.f32 %v203_v47, %v118_v45 }
 0x193   :  { %v205_v49 = vpop.f32.mrf.mxu1 }
 0x194   :  { %v206_v50 = vadd.f32 %v205_v49, %v122_v46  ;;  %v210_v51 = vmax.f32 %v204_v48, 0.0 }
 0x195   :  { %v207_v52 = vpop.f32.mrf.mxu1 }
 0x196   :  { %v211_v53 = vmax.f32 %v206_v50, 0.0  ;;  %v212_v56 = vpack.c.bf16 %v210_v51, %v210_v51 }
 0x197   :  { %v208_v54 = vpop.f32.mrf.mxu1 }
 0x198   :  { %v213_v55 = vpack.c.bf16 %v211_v53, %v211_v53 }
 0x19a   :  { %381 = vmatprep.mubr.bf16.mxu0 %v213_v55 }
 0x19b   :  { %382 = vmatmul.mubr.bf16.vlgmr.msra.gmra.mxu0 %v212_v56 }
 0x25b   :  { %v544_v60 = vpop.f32.mrf.mxu0 }
 0x25d   :  { %v545_v62 = vpop.f32.mrf.mxu0 }
 0x25e   :  { %v546_v63 = vadd.f32 %v545_v62, %v544_v60 }
 0x25f   :  { %v547_v0 = vpop.f32.mrf.mxu0 }
 0x260   :  { %v384_v2 = vadd.f32 %v546_v63, %v502_v61 }
 0x261   :  { %v548_v3 = vpop.f32.mrf.mxu0 }
 0x262   :  { %v389_v4 = vmax.f32 %v384_v2, 0.0 }
 0x264   :  { %v390_v5 = vpack.c.bf16 %v389_v4, %v389_v4 }
 0x266   :  { %572 = vmatmul.mubr.msk.bf16.vlgmr.msra.gmra.mxu1 %vm165_vm3, %v390_v5 }
 0x326   :  { %v467_v6 = vpop.f32.mrf.mxu1 }
 0x327   :  { %v468_v7 = vadd.f32 %v519_v1, %v467_v6 }
 0x328   :  { %v573_v8 = vpop.f32.mrf.mxu1 }
 0x329   :  { %474 = vst.msk [vmem:[#allocation2] sm:$0xff] %vm473_vm4, %v468_v7 }
 0x32a   :  { %v470_v9 = vpop.f32.mrf.mxu1 }
 0x32b   :  { %624 = shalt.err (!%p621_p4)
}
 0x32c   :  { %484 = dma.vmem_to_hbm [thread:$0]  %s482_s26, 128, %s818_s9, [#allocation3]   ;;  %v574_v10 = vpop.f32.mrf.mxu1 }
 0x32d   :  { %633 = dma.done.wait [#allocation3], 128  }
 0x32e   :  { %634 = vsyncadd [#allocation3], 4294967168 }
 0x32f   :  { %488 = vsyncpa [#allocation3], 1 }

</bundles_post_ra>
